<compile_context>
chip_gen: v5e
topology: v5e:2x2
jax: 0.10.0
libtpu: 0.0.40
codegen_flags: <defaults>
</compile_context>

<pallas_src>
import functools

import jax
import jax.numpy as jnp
from jax.experimental import pallas as pl
from jax.experimental.pallas import tpu as pltpu


def _transition_kernel(x_ref, w1t_ref, b1_ref, w2_ref, b2_ref,
                       bn_a_ref, bn_b_ref, wconv_ref, o_ref, *,
                       inv_hw, ew_dtype):
    """NB images per grid step.

    x_ref   : (4, NB, H2*W2, C) bf16, quad layout:
              x[q, n, ho*W2+wo, c] == input[n, c, 2*ho + q//2, 2*wo + q%2]
    w1t/b1  : (Cr, C), (1, Cr)    DFA squeeze FC (w1 pre-transposed)
    w2/b2   : (Cr, C), (1, C)     DFA excite FC
    bn_a/b  : (1, C)              folded BatchNorm scale / shift
    wconv   : (C, Cout) bf16      1x1 conv weight, 0.25 pool factor folded in
    o_ref   : (NB, H2*W2, Cout) bf16
    """
    nb, hw2, c = x_ref.shape[1], x_ref.shape[2], x_ref.shape[3]
    cout = wconv_ref.shape[1]

    # ---- DFA global average pool: bf16 VMEM reads, f32 accumulation -------
    # (only one (NB, HW2, C) f32 slab live at a time; no full 4-quad copy).
    gap = jnp.sum(x_ref[0].astype(jnp.float32), axis=1, keepdims=True)
    for q in range(1, 4):
        gap = gap + jnp.sum(x_ref[q].astype(jnp.float32), axis=1,
                            keepdims=True)
    gap = gap * inv_hw                                          # (NB, 1, C)

    # ---- DFA FCs: tiny, kept off the MXU (VPU mul + XLU reduce + EUP) -----
    hid = jnp.maximum(
        jnp.sum(gap * w1t_ref[...], axis=-1) + b1_ref[...], 0.0)   # (NB, Cr)
    logits = jnp.sum(hid[:, :, None] * w2_ref[...], axis=1) + b2_ref[...]
    att = pl.reciprocal(1.0 + jnp.exp(-logits), approx=True)       # (NB, C)

    # ---- Fused (attention * folded-BN) scale, one multiply per channel ----
    scale = (att * bn_a_ref[...])[:, None, :].astype(ew_dtype)     # (NB,1,C)
    shift = bn_b_ref[...].astype(ew_dtype)                         # (1, C)

    # ---- scale/shift/ReLU (packed bf16 on v6e/v7x), pool as f32 accum -----
    def relu_quad(q):
        y = jnp.maximum(x_ref[q].astype(ew_dtype) * scale + shift, 0.0)
        return y.astype(jnp.float32)

    p = relu_quad(0)
    for q in range(1, 4):
        p = p + relu_quad(q)                                    # (NB, HW2, C)

    # ---- 1x1 conv on the MXU (pool already commuted; 0.25 in wconv) -------
    pb = p.astype(jnp.bfloat16).reshape(nb * hw2, c)
    out = jnp.dot(pb, wconv_ref[...], preferred_element_type=jnp.float32)
    o_ref[...] = out.reshape(nb, hw2, cout).astype(o_ref.dtype)


def make_params(key, in_channels, reduction=4, eps=1e-5):
    c = in_channels
    cr = max(1, c // reduction)
    cout = c // 2
    k1, k2, k3, k4, k5, k6, k7, k8 = jax.random.split(key, 8)
    return {
        "w1": jax.random.normal(k1, (c, cr), jnp.float32) * 0.2,
        "b1": jax.random.normal(k2, (cr,), jnp.float32) * 0.1,
        "w2": jax.random.normal(k3, (cr, c), jnp.float32) * 0.2,
        "b2": jax.random.normal(k4, (c,), jnp.float32) * 0.1,
        # Non-trivial BatchNorm running stats so the fold is exercised.
        "bn_gamma": 1.0 + 0.1 * jax.random.normal(k6, (c,), jnp.float32),
        "bn_beta": 0.1 * jax.random.normal(k7, (c,), jnp.float32),
        "bn_mean": 0.1 * jax.random.normal(k8, (c,), jnp.float32),
        "bn_var": jnp.ones((c,), jnp.float32),
        "wconv": jax.random.normal(k5, (c, cout), jnp.float32) * 0.1,
        "eps": eps,
    }


def _folded_bn(params):
    inv_std = 1.0 / jnp.sqrt(params["bn_var"] + params["eps"])
    bn_a = (params["bn_gamma"] * inv_std).reshape(1, -1)
    bn_b = (params["bn_beta"] - params["bn_mean"] *
            params["bn_gamma"] * inv_std).reshape(1, -1)
    return bn_a, bn_b


def _pick_block_images(n, hw2, c, cout, budget_bytes):
    """Largest divisor of n that fits the VMEM budget, keeps >=2 grid steps
    (both v7x TensorCores busy) and stops once the MXU M dim is filled."""
    per_img = (2 * 4 * hw2 * c * 2      # double-buffered bf16 input block
               + 2 * hw2 * cout * 2     # double-buffered bf16 output block
               + 2 * hw2 * c * 4)       # f32 pool accumulator + ew temp
    nb = 1
    for cand in range(2, n + 1):
        if n % cand:
            continue
        if cand * per_img > budget_bytes:
            break
        if n // cand < 2:
            break
        nb = cand
        if cand * hw2 >= 512:
            break
    return nb


def transition_block(x_nchw, params):
    N, C, H, W = x_nchw.shape
    # AvgPool2d(2) with odd H/W drops the last row/col; not supported here.
    assert H % 2 == 0 and W % 2 == 0 and C % 2 == 0
    Cout = C // 2
    H2, W2 = H // 2, W // 2
    HW2 = H2 * W2
    Cr = params["w1"].shape[1]

    # Chip-aware knobs (fallbacks are safe on every generation).
    try:
        info = pltpu.get_tpu_info()
        vmem_cap = int(info.vmem_capacity_bytes)
        is_v5 = "5" in str(getattr(info, "chip_version", ""))
    except Exception:
        vmem_cap = 64 * 1024 * 1024
        is_v5 = False
    vmem_limit = min(vmem_cap * 3 // 4, 96 * 1024 * 1024)
    # v5e has an f32-only VPU; v6e/v7x process packed bf16 at 2x throughput.
    ew_dtype = jnp.float32 if is_v5 else jnp.bfloat16

    nb = _pick_block_images(N, HW2, C, Cout, vmem_limit // 2)

    # NCHW -> (4, N, H2*W2, C) quad layout, bf16 (half the HBM read traffic).
    # [layout plumbing only; at the model level keep this layout between
    #  blocks and drop both wrapper transposes]
    xq = x_nchw.reshape(N, C, H2, 2, W2, 2)
    xq = jnp.transpose(xq, (3, 5, 0, 2, 4, 1)).reshape(4, N, HW2, C)
    xq = xq.astype(jnp.bfloat16)

    bn_a, bn_b = _folded_bn(params)
    w1t = params["w1"].T                                # (Cr, C)
    b1 = params["b1"].reshape(1, Cr)                    # (1, Cr)
    w2 = params["w2"]                                   # (Cr, C)
    b2 = params["b2"].reshape(1, C)                     # (1, C)
    # Fold the 2x2 average-pool 1/4 factor into the (linear) conv weight.
    wconv = (params["wconv"] * 0.25).astype(jnp.bfloat16)   # (C, Cout)

    weight_bytes = sum(int(a.size) * a.dtype.itemsize
                       for a in (w1t, b1, w2, b2, bn_a, bn_b, wconv))
    cost = pl.CostEstimate(
        flops=2 * N * HW2 * C * Cout + 12 * N * 4 * HW2 * C,
        transcendentals=N * C,
        bytes_accessed=N * 4 * HW2 * C * 2 + N * HW2 * Cout * 2 + weight_bytes,
    )

    kernel = pl.pallas_call(
        functools.partial(_transition_kernel,
                          inv_hw=1.0 / float(H * W), ew_dtype=ew_dtype),
        out_shape=jax.ShapeDtypeStruct((N, HW2, Cout), jnp.bfloat16),
        grid_spec=pltpu.PrefetchScalarGridSpec(
            num_scalar_prefetch=0,
            grid=(N // nb,),
            in_specs=[
                pl.BlockSpec((4, nb, HW2, C), lambda n: (0, n, 0, 0)),
                pl.BlockSpec((Cr, C), lambda n: (0, 0)),
                pl.BlockSpec((1, Cr), lambda n: (0, 0)),
                pl.BlockSpec((Cr, C), lambda n: (0, 0)),
                pl.BlockSpec((1, C), lambda n: (0, 0)),
                pl.BlockSpec((1, C), lambda n: (0, 0)),
                pl.BlockSpec((1, C), lambda n: (0, 0)),
                pl.BlockSpec((C, Cout), lambda n: (0, 0)),
            ],
            out_specs=pl.BlockSpec((nb, HW2, Cout), lambda n: (n, 0, 0)),
        ),
        compiler_params=pltpu.CompilerParams(
            dimension_semantics=("parallel",),
            vmem_limit_bytes=int(vmem_limit),
        ),
        cost_estimate=cost,
    )
    out = kernel(xq, w1t, b1, w2, b2, bn_a, bn_b, wconv)    # (N, HW2, Cout)
    out = out.reshape(N, H2, W2, Cout)
    # [layout plumbing: drop at the model level by consuming NHWC directly]
    return jnp.transpose(out, (0, 3, 1, 2)).astype(x_nchw.dtype)  # NCHW


def reference(x_nchw, params):
    """Pure-JAX f32 reference mirroring the PyTorch NCHW semantics."""
    N, C, H, W = x_nchw.shape
    Cout = C // 2
    gap = x_nchw.mean(axis=(2, 3))                                # (N, C)
    hid = jnp.maximum(gap @ params["w1"] + params["b1"], 0.0)
    att = jax.nn.sigmoid(hid @ params["w2"] + params["b2"])       # (N, C)
    x_att = x_nchw * att[:, :, None, None]
    bn_a, bn_b = _folded_bn(params)
    y = jnp.maximum(x_att * bn_a.reshape(1, C, 1, 1)
                    + bn_b.reshape(1, C, 1, 1), 0.0)
    z = jnp.einsum("nchw,cd->ndhw", y, params["wconv"])           # 1x1 conv
    out = z.reshape(N, Cout, H // 2, 2, W // 2, 2).mean(axis=(3, 5))
    return out


if __name__ == "__main__":
    key = jax.random.PRNGKey(0)
    kx, kp = jax.random.split(key)

    N, C, H, W = 2, 16, 16, 16
    x = jax.random.normal(kx, (N, C, H, W), dtype=jnp.float32)
    params = make_params(kp, C)

    out = jax.block_until_ready(transition_block(x, params))
    ref = reference(x, params)

    assert out.shape == (N, C // 2, H // 2, W // 2), out.shape
    # bf16 activations / elementwise / output inside the kernel vs f32 ref.
    assert jnp.allclose(out, ref, atol=2.5e-2, rtol=2.5e-2), \
        float(jnp.max(jnp.abs(out - ref)))
    print("KERNEL_OK")
</pallas_src>

<mosaic_0001>
module attributes {stable_mosaic.version = 11 : i64} {
  func.func @_transition_kernel(%arg0: i32, %arg1: memref<4x1x64x16xbf16, #tpu.memory_space<vmem>>, %arg2: memref<4x16xf32, #tpu.memory_space<vmem>>, %arg3: memref<1x4xf32, #tpu.memory_space<vmem>>, %arg4: memref<4x16xf32, #tpu.memory_space<vmem>>, %arg5: memref<1x16xf32, #tpu.memory_space<vmem>>, %arg6: memref<1x16xf32, #tpu.memory_space<vmem>>, %arg7: memref<1x16xf32, #tpu.memory_space<vmem>>, %arg8: memref<16x8xbf16, #tpu.memory_space<vmem>>, %arg9: memref<1x64x8xbf16, #tpu.memory_space<vmem>>) attributes {dimension_semantics = [#tpu.dimension_semantics<parallel>], iteration_bounds = array<i64: 2>, scalar_prefetch = 0 : i64, scratch_operands = 0 : i64, tpu.core_type = #tpu.core_type<tc>, window_params = [{transform_indices = @transform_0, window_bounds = array<i64: 4, 1, 64, 16>}, {pipeline_mode = #tpu.pipeline_mode<synchronous>, transform_indices = @transform_1, window_bounds = array<i64: 4, 16>}, {pipeline_mode = #tpu.pipeline_mode<synchronous>, transform_indices = @transform_2, window_bounds = array<i64: 1, 4>}, {pipeline_mode = #tpu.pipeline_mode<synchronous>, transform_indices = @transform_3, window_bounds = array<i64: 4, 16>}, {pipeline_mode = #tpu.pipeline_mode<synchronous>, transform_indices = @transform_4, window_bounds = array<i64: 1, 16>}, {pipeline_mode = #tpu.pipeline_mode<synchronous>, transform_indices = @transform_5, window_bounds = array<i64: 1, 16>}, {pipeline_mode = #tpu.pipeline_mode<synchronous>, transform_indices = @transform_6, window_bounds = array<i64: 1, 16>}, {pipeline_mode = #tpu.pipeline_mode<synchronous>, transform_indices = @transform_7, window_bounds = array<i64: 16, 8>}, {transform_indices = @transform_8, window_bounds = array<i64: 1, 64, 8>}]} {
    %c0 = arith.constant 0 : index
    %c0_0 = arith.constant 0 : index
    %c0_1 = arith.constant 0 : index
    %c0_2 = arith.constant 0 : index
    %0 = vector.load %arg1[%c0, %c0_0, %c0_1, %c0_2] : memref<4x1x64x16xbf16, #tpu.memory_space<vmem>>, vector<1x1x64x16xbf16>
    %1 = vector.shape_cast %0 : vector<1x1x64x16xbf16> to vector<1x64x16xbf16>
    %2 = arith.extf %1 : vector<1x64x16xbf16> to vector<1x64x16xf32>
    %cst = arith.constant dense<0.000000e+00> : vector<1x16xf32>
    %3 = vector.multi_reduction <add>, %2, %cst [1] : vector<1x64x16xf32> to vector<1x16xf32>
    %4 = vector.shape_cast %3 : vector<1x16xf32> to vector<1x1x16xf32>
    %c1 = arith.constant 1 : index
    %c0_3 = arith.constant 0 : index
    %c0_4 = arith.constant 0 : index
    %c0_5 = arith.constant 0 : index
    %5 = vector.load %arg1[%c1, %c0_3, %c0_4, %c0_5] : memref<4x1x64x16xbf16, #tpu.memory_space<vmem>>, vector<1x1x64x16xbf16>
    %6 = vector.shape_cast %5 : vector<1x1x64x16xbf16> to vector<1x64x16xbf16>
    %7 = arith.extf %6 : vector<1x64x16xbf16> to vector<1x64x16xf32>
    %cst_6 = arith.constant dense<0.000000e+00> : vector<1x16xf32>
    %8 = vector.multi_reduction <add>, %7, %cst_6 [1] : vector<1x64x16xf32> to vector<1x16xf32>
    %9 = vector.shape_cast %8 : vector<1x16xf32> to vector<1x1x16xf32>
    %10 = arith.addf %4, %9 : vector<1x1x16xf32>
    %c2 = arith.constant 2 : index
    %c0_7 = arith.constant 0 : index
    %c0_8 = arith.constant 0 : index
    %c0_9 = arith.constant 0 : index
    %11 = vector.load %arg1[%c2, %c0_7, %c0_8, %c0_9] : memref<4x1x64x16xbf16, #tpu.memory_space<vmem>>, vector<1x1x64x16xbf16>
    %12 = vector.shape_cast %11 : vector<1x1x64x16xbf16> to vector<1x64x16xbf16>
    %13 = arith.extf %12 : vector<1x64x16xbf16> to vector<1x64x16xf32>
    %cst_10 = arith.constant dense<0.000000e+00> : vector<1x16xf32>
    %14 = vector.multi_reduction <add>, %13, %cst_10 [1] : vector<1x64x16xf32> to vector<1x16xf32>
    %15 = vector.shape_cast %14 : vector<1x16xf32> to vector<1x1x16xf32>
    %16 = arith.addf %10, %15 : vector<1x1x16xf32>
    %c3 = arith.constant 3 : index
    %c0_11 = arith.constant 0 : index
    %c0_12 = arith.constant 0 : index
    %c0_13 = arith.constant 0 : index
    %17 = vector.load %arg1[%c3, %c0_11, %c0_12, %c0_13] : memref<4x1x64x16xbf16, #tpu.memory_space<vmem>>, vector<1x1x64x16xbf16>
    %18 = vector.shape_cast %17 : vector<1x1x64x16xbf16> to vector<1x64x16xbf16>
    %19 = arith.extf %18 : vector<1x64x16xbf16> to vector<1x64x16xf32>
    %cst_14 = arith.constant dense<0.000000e+00> : vector<1x16xf32>
    %20 = vector.multi_reduction <add>, %19, %cst_14 [1] : vector<1x64x16xf32> to vector<1x16xf32>
    %21 = vector.shape_cast %20 : vector<1x16xf32> to vector<1x1x16xf32>
    %22 = arith.addf %16, %21 : vector<1x1x16xf32>
    %cst_15 = arith.constant 3.906250e-03 : f32
    %23 = vector.broadcast %cst_15 : f32 to vector<1x1x16xf32>
    %24 = arith.mulf %22, %23 : vector<1x1x16xf32>
    %c0_16 = arith.constant 0 : index
    %c0_17 = arith.constant 0 : index
    %25 = vector.load %arg2[%c0_16, %c0_17] : memref<4x16xf32, #tpu.memory_space<vmem>>, vector<4x16xf32>
    %26 = vector.shape_cast %25 : vector<4x16xf32> to vector<1x4x16xf32>
    %27 = vector.broadcast %24 : vector<1x1x16xf32> to vector<1x4x16xf32>
    %28 = arith.mulf %27, %26 : vector<1x4x16xf32>
    %cst_18 = arith.constant dense<0.000000e+00> : vector<1x4xf32>
    %29 = vector.multi_reduction <add>, %28, %cst_18 [2] : vector<1x4x16xf32> to vector<1x4xf32>
    %c0_19 = arith.constant 0 : index
    %c0_20 = arith.constant 0 : index
    %30 = vector.load %arg3[%c0_19, %c0_20] : memref<1x4xf32, #tpu.memory_space<vmem>>, vector<1x4xf32>
    %31 = arith.addf %29, %30 : vector<1x4xf32>
    %cst_21 = arith.constant 0.000000e+00 : f32
    %32 = vector.broadcast %cst_21 : f32 to vector<1x4xf32>
    %33 = arith.maximumf %31, %32 : vector<1x4xf32>
    %34 = vector.shape_cast %33 : vector<1x4xf32> to vector<1x4x1xf32>
    %c0_22 = arith.constant 0 : index
    %c0_23 = arith.constant 0 : index
    %35 = vector.load %arg4[%c0_22, %c0_23] : memref<4x16xf32, #tpu.memory_space<vmem>>, vector<4x16xf32>
    %36 = vector.shape_cast %35 : vector<4x16xf32> to vector<1x4x16xf32>
    %37 = vector.broadcast %34 : vector<1x4x1xf32> to vector<1x4x16xf32>
    %38 = arith.mulf %37, %36 : vector<1x4x16xf32>
    %cst_24 = arith.constant dense<0.000000e+00> : vector<1x16xf32>
    %39 = vector.multi_reduction <add>, %38, %cst_24 [1] : vector<1x4x16xf32> to vector<1x16xf32>
    %c0_25 = arith.constant 0 : index
    %c0_26 = arith.constant 0 : index
    %40 = vector.load %arg5[%c0_25, %c0_26] : memref<1x16xf32, #tpu.memory_space<vmem>>, vector<1x16xf32>
    %41 = arith.addf %39, %40 : vector<1x16xf32>
    %cst_27 = arith.constant 0.000000e+00 : f32
    %42 = vector.broadcast %cst_27 : f32 to vector<1x16xf32>
    %43 = arith.subf %42, %41 : vector<1x16xf32>
    %44 = math.exp %43 : vector<1x16xf32>
    %cst_28 = arith.constant 1.000000e+00 : f32
    %45 = vector.broadcast %cst_28 : f32 to vector<1x16xf32>
    %46 = arith.addf %45, %44 : vector<1x16xf32>
    %47 = tpu.reciprocal %46 {approx = true} : vector<1x16xf32> -> vector<1x16xf32>
    %c0_29 = arith.constant 0 : index
    %c0_30 = arith.constant 0 : index
    %48 = vector.load %arg6[%c0_29, %c0_30] : memref<1x16xf32, #tpu.memory_space<vmem>>, vector<1x16xf32>
    %49 = arith.mulf %47, %48 : vector<1x16xf32>
    %50 = vector.shape_cast %49 : vector<1x16xf32> to vector<1x1x16xf32>
    %51 = arith.truncf %50 : vector<1x1x16xf32> to vector<1x1x16xbf16>
    %c0_31 = arith.constant 0 : index
    %c0_32 = arith.constant 0 : index
    %52 = vector.load %arg7[%c0_31, %c0_32] : memref<1x16xf32, #tpu.memory_space<vmem>>, vector<1x16xf32>
    %53 = arith.truncf %52 : vector<1x16xf32> to vector<1x16xbf16>
    %c0_33 = arith.constant 0 : index
    %c0_34 = arith.constant 0 : index
    %c0_35 = arith.constant 0 : index
    %c0_36 = arith.constant 0 : index
    %54 = vector.load %arg1[%c0_33, %c0_34, %c0_35, %c0_36] : memref<4x1x64x16xbf16, #tpu.memory_space<vmem>>, vector<1x1x64x16xbf16>
    %55 = vector.shape_cast %54 : vector<1x1x64x16xbf16> to vector<1x64x16xbf16>
    %56 = vector.broadcast %51 : vector<1x1x16xbf16> to vector<1x64x16xbf16>
    %57 = arith.mulf %55, %56 : vector<1x64x16xbf16>
    %58 = vector.shape_cast %53 : vector<1x16xbf16> to vector<1x1x16xbf16>
    %59 = vector.broadcast %58 : vector<1x1x16xbf16> to vector<1x64x16xbf16>
    %60 = arith.addf %57, %59 : vector<1x64x16xbf16>
    %cst_37 = arith.constant 0.000000e+00 : bf16
    %61 = vector.broadcast %cst_37 : bf16 to vector<1x64x16xbf16>
    %62 = arith.maximumf %60, %61 : vector<1x64x16xbf16>
    %63 = arith.extf %62 : vector<1x64x16xbf16> to vector<1x64x16xf32>
    %c1_38 = arith.constant 1 : index
    %c0_39 = arith.constant 0 : index
    %c0_40 = arith.constant 0 : index
    %c0_41 = arith.constant 0 : index
    %64 = vector.load %arg1[%c1_38, %c0_39, %c0_40, %c0_41] : memref<4x1x64x16xbf16, #tpu.memory_space<vmem>>, vector<1x1x64x16xbf16>
    %65 = vector.shape_cast %64 : vector<1x1x64x16xbf16> to vector<1x64x16xbf16>
    %66 = vector.broadcast %51 : vector<1x1x16xbf16> to vector<1x64x16xbf16>
    %67 = arith.mulf %65, %66 : vector<1x64x16xbf16>
    %68 = vector.shape_cast %53 : vector<1x16xbf16> to vector<1x1x16xbf16>
    %69 = vector.broadcast %68 : vector<1x1x16xbf16> to vector<1x64x16xbf16>
    %70 = arith.addf %67, %69 : vector<1x64x16xbf16>
    %cst_42 = arith.constant 0.000000e+00 : bf16
    %71 = vector.broadcast %cst_42 : bf16 to vector<1x64x16xbf16>
    %72 = arith.maximumf %70, %71 : vector<1x64x16xbf16>
    %73 = arith.extf %72 : vector<1x64x16xbf16> to vector<1x64x16xf32>
    %74 = arith.addf %63, %73 : vector<1x64x16xf32>
    %c2_43 = arith.constant 2 : index
    %c0_44 = arith.constant 0 : index
    %c0_45 = arith.constant 0 : index
    %c0_46 = arith.constant 0 : index
    %75 = vector.load %arg1[%c2_43, %c0_44, %c0_45, %c0_46] : memref<4x1x64x16xbf16, #tpu.memory_space<vmem>>, vector<1x1x64x16xbf16>
    %76 = vector.shape_cast %75 : vector<1x1x64x16xbf16> to vector<1x64x16xbf16>
    %77 = vector.broadcast %51 : vector<1x1x16xbf16> to vector<1x64x16xbf16>
    %78 = arith.mulf %76, %77 : vector<1x64x16xbf16>
    %79 = vector.shape_cast %53 : vector<1x16xbf16> to vector<1x1x16xbf16>
    %80 = vector.broadcast %79 : vector<1x1x16xbf16> to vector<1x64x16xbf16>
    %81 = arith.addf %78, %80 : vector<1x64x16xbf16>
    %cst_47 = arith.constant 0.000000e+00 : bf16
    %82 = vector.broadcast %cst_47 : bf16 to vector<1x64x16xbf16>
    %83 = arith.maximumf %81, %82 : vector<1x64x16xbf16>
    %84 = arith.extf %83 : vector<1x64x16xbf16> to vector<1x64x16xf32>
    %85 = arith.addf %74, %84 : vector<1x64x16xf32>
    %c3_48 = arith.constant 3 : index
    %c0_49 = arith.constant 0 : index
    %c0_50 = arith.constant 0 : index
    %c0_51 = arith.constant 0 : index
    %86 = vector.load %arg1[%c3_48, %c0_49, %c0_50, %c0_51] : memref<4x1x64x16xbf16, #tpu.memory_space<vmem>>, vector<1x1x64x16xbf16>
    %87 = vector.shape_cast %86 : vector<1x1x64x16xbf16> to vector<1x64x16xbf16>
    %88 = vector.broadcast %51 : vector<1x1x16xbf16> to vector<1x64x16xbf16>
    %89 = arith.mulf %87, %88 : vector<1x64x16xbf16>
    %90 = vector.shape_cast %53 : vector<1x16xbf16> to vector<1x1x16xbf16>
    %91 = vector.broadcast %90 : vector<1x1x16xbf16> to vector<1x64x16xbf16>
    %92 = arith.addf %89, %91 : vector<1x64x16xbf16>
    %cst_52 = arith.constant 0.000000e+00 : bf16
    %93 = vector.broadcast %cst_52 : bf16 to vector<1x64x16xbf16>
    %94 = arith.maximumf %92, %93 : vector<1x64x16xbf16>
    %95 = arith.extf %94 : vector<1x64x16xbf16> to vector<1x64x16xf32>
    %96 = arith.addf %85, %95 : vector<1x64x16xf32>
    %97 = arith.truncf %96 : vector<1x64x16xf32> to vector<1x64x16xbf16>
    %98 = vector.shape_cast %97 : vector<1x64x16xbf16> to vector<64x16xbf16>
    %c0_53 = arith.constant 0 : index
    %c0_54 = arith.constant 0 : index
    %99 = vector.load %arg8[%c0_53, %c0_54] : memref<16x8xbf16, #tpu.memory_space<vmem>>, vector<16x8xbf16>
    %cst_55 = arith.constant dense<0.000000e+00> : vector<64x8xf32>
    %100 = tpu.matmul %98, %99, %cst_55 {dimension_numbers = #tpu.dot_dimension_numbers<[1], [0], [0], [1], [0, 0, 1, 1], [], []>} : vector<64x16xbf16>, vector<16x8xbf16>, vector<64x8xf32> -> vector<64x8xf32>
    %101 = vector.shape_cast %100 : vector<64x8xf32> to vector<1x64x8xf32>
    %102 = arith.truncf %101 : vector<1x64x8xf32> to vector<1x64x8xbf16>
    %c0_56 = arith.constant 0 : index
    %c0_57 = arith.constant 0 : index
    %c0_58 = arith.constant 0 : index
    %103 = vector.load %arg9[%c0_56, %c0_57, %c0_58] : memref<1x64x8xbf16, #tpu.memory_space<vmem>>, vector<1x64x8xbf16>
    tpu.vector_store %arg9[%c0_56, %c0_57, %c0_58], %102 {strides = array<i32>} : memref<1x64x8xbf16, #tpu.memory_space<vmem>>, vector<1x64x8xbf16>,
    return
  }
  func.func @transform_0(%arg0: i32) -> (i32, i32, i32, i32) {
    %c0_i32 = arith.constant 0 : i32
    %c0_i32_0 = arith.constant 0 : i32
    %c0_i32_1 = arith.constant 0 : i32
    %c0_i32_2 = arith.constant 0 : i32
    return %c0_i32, %arg0, %c0_i32_0, %c0_i32_1 : i32, i32, i32, i32
  }
  func.func @transform_1(%arg0: i32) -> (i32, i32) {
    %c0_i32 = arith.constant 0 : i32
    %c0_i32_0 = arith.constant 0 : i32
    %c0_i32_1 = arith.constant 0 : i32
    return %c0_i32, %c0_i32_0 : i32, i32
  }
  func.func @transform_2(%arg0: i32) -> (i32, i32) {
    %c0_i32 = arith.constant 0 : i32
    %c0_i32_0 = arith.constant 0 : i32
    %c0_i32_1 = arith.constant 0 : i32
    return %c0_i32, %c0_i32_0 : i32, i32
  }
  func.func @transform_3(%arg0: i32) -> (i32, i32) {
    %c0_i32 = arith.constant 0 : i32
    %c0_i32_0 = arith.constant 0 : i32
    %c0_i32_1 = arith.constant 0 : i32
    return %c0_i32, %c0_i32_0 : i32, i32
  }
  func.func @transform_4(%arg0: i32) -> (i32, i32) {
    %c0_i32 = arith.constant 0 : i32
    %c0_i32_0 = arith.constant 0 : i32
    %c0_i32_1 = arith.constant 0 : i32
    return %c0_i32, %c0_i32_0 : i32, i32
  }
  func.func @transform_5(%arg0: i32) -> (i32, i32) {
    %c0_i32 = arith.constant 0 : i32
    %c0_i32_0 = arith.constant 0 : i32
    %c0_i32_1 = arith.constant 0 : i32
    return %c0_i32, %c0_i32_0 : i32, i32
  }
  func.func @transform_6(%arg0: i32) -> (i32, i32) {
    %c0_i32 = arith.constant 0 : i32
    %c0_i32_0 = arith.constant 0 : i32
    %c0_i32_1 = arith.constant 0 : i32
    return %c0_i32, %c0_i32_0 : i32, i32
  }
  func.func @transform_7(%arg0: i32) -> (i32, i32) {
    %c0_i32 = arith.constant 0 : i32
    %c0_i32_0 = arith.constant 0 : i32
    %c0_i32_1 = arith.constant 0 : i32
    return %c0_i32, %c0_i32_0 : i32, i32
  }
  func.func @transform_8(%arg0: i32) -> (i32, i32, i32) {
    %c0_i32 = arith.constant 0 : i32
    %c0_i32_0 = arith.constant 0 : i32
    %c0_i32_1 = arith.constant 0 : i32
    return %arg0, %c0_i32, %c0_i32_0 : i32, i32, i32
  }
}

</mosaic_0001>

<bundles_post_ra>
// kernel: tpu_custom_call.1
= control target key start
LH: loop header
LB: loop body
LE: loop exit
PB: predicated region body
PF: predicated region fallthrough
CT: control target
= control target key end

     0   :  { %s1385_s27 = smov 0   ;;  %s1387_s28 = smov 0   ;;  %s1802_s0 = inlined_call_operand.vmem [shape: bf16[4,2,64,16], index: 0, kind: input, shape index: {}]   ;;  %s1803_s1 = inlined_call_operand.vmem [shape: f32[4,16], index: 1, kind: input, shape index: {}]   ;;  %s1804_s2 = inlined_call_operand.vmem [shape: f32[1,4], index: 2, kind: input, shape index: {}]   ;;  %s1805_s3 = inlined_call_operand.vmem [shape: f32[4,16], index: 3, kind: input, shape index: {}]   ;;  %s1806_s4 = inlined_call_operand.vmem [shape: f32[1,16], index: 4, kind: input, shape index: {}]   ;;  %s1807_s5 = inlined_call_operand.vmem [shape: f32[1,16], index: 5, kind: input, shape index: {}]   ;;  %s1808_s6 = inlined_call_operand.vmem [shape: f32[1,16], index: 6, kind: input, shape index: {}]   ;;  %s1809_s7 = inlined_call_operand.vmem [shape: bf16[16,8], index: 7, kind: input, shape index: {}]   ;;  %s1810_s8 = inlined_call_operand.vmem [shape: bf16[2,64,8], index: 8, kind: output, shape index: {}]  }
   0x1   :  { %s1389_s29 = smov 0  }
   0x2 LB: > { %s1152_s30 = sadd.s32 4294967295, %s1337_s29   ;;  %s1402_s9 = sadd.s32 1, %s1337_s29   ;;  %s1337_s29 = sphi %s1389_s29, %s1835_s29   ;;  %s1333_s28 = sphi %s1387_s28, %s1834_s28   ;;  %s1329_s27 = sphi %s1385_s27, %s1833_s27  }
   0x3   : > { %s22_s10 = ssub.s32 %s1337_s29, %s1402_s9  ;;  %s25_s11 = sadd.s32 1, %s1333_s28 }
   0x4   : > { %p23_p0 = scmp.eq.s32.totalorder %s22_s10, 0  ;;  %p32_p1 = scmp.ne.s32.totalorder %s1333_s28, %s1329_s27 }
   0x5   : > { %p33_p2 = scmp.eq.s32.totalorder %s1337_s29, 0  ;;  %p1155_p4 = scmp.ge.s32.totalorder %s1337_s29, 2 }
   0x6   : > { %s1411_s12 = scalar_select %p23_p0, %s1333_s28, %s25_s11  }
   0x7   : > { %p34_p3 = por %p33_p2, %p32_p1  ;;  %252 = sbr.rel (%p1155_p4) target bundleno = 32 (0x20), region = 44 }
   0xc   : > { %255 = sbr.rel (!%p34_p3) target bundleno = 32 (0x20), region = 48  ;;  %s257_s13 = sand.u32 (%p34_p3), 1, %s1333_s28  }
   0xd   : > { %s1197_s14 = sshll.u32 (%p34_p3), %s1337_s29, 5  ;;  %s1156_s15 = sshll.u32 (%p34_p3), %s257_s13, 7 }
   0xe   : > { %s1419_s18 = scalar_lea.vmem (%p34_p3), %s1802_s0, %s1197_s14  ;;  %s259_s19 = scalar_lea.vmem (%p34_p3), [#allocation2], %s1156_s15 }
   0xf   : > { %v279_v0 = vld [vmem:[%s1419_s18] sm:$0xff] (%p34_p3)   ;;  %v283_v1 = vld [vmem:[%s1419_s18 + $0x8] sm:$0xff] (%p34_p3)   ;;  %v287_v2 = vld [vmem:[%s1419_s18 + $0x10] sm:$0xff] (%p34_p3)  }
  0x10   : > { %280 = vst [vmem:[%s259_s19] sm:$0xff] (%p34_p3), %v279_v0   ;;  %v291_v3 = vld [vmem:[%s1419_s18 + $0x18] sm:$0xff] (%p34_p3)   ;;  %v295_v4 = vld [vmem:[%s1419_s18 + $0x40] sm:$0xff] (%p34_p3)   ;;  %v299_v5 = vld [vmem:[%s1419_s18 + $0x48] sm:$0xff] (%p34_p3)  }
  0x11   : > { %284 = vst [vmem:[%s259_s19 + $0x8] sm:$0xff] %v283_v1   ;;  %v303_v6 = vld [vmem:[%s1419_s18 + $0x50] sm:$0xff]   ;;  %v307_v7 = vld [vmem:[%s1419_s18 + $0x58] sm:$0xff]   ;;  %v311_v8 = vld [vmem:[%s1419_s18 + $0x80] sm:$0xff]  }
  0x12   : > { %288 = vst [vmem:[%s259_s19 + $0x10] sm:$0xff] %v287_v2   ;;  %v315_v9 = vld [vmem:[%s1419_s18 + $0x88] sm:$0xff]   ;;  %v319_v10 = vld [vmem:[%s1419_s18 + $0x90] sm:$0xff]   ;;  %v323_v11 = vld [vmem:[%s1419_s18 + $0x98] sm:$0xff]  }
  0x13   : > { %292 = vst [vmem:[%s259_s19 + $0x18] sm:$0xff] %v291_v3   ;;  %v327_v12 = vld [vmem:[%s1419_s18 + $0xc0] sm:$0xff]   ;;  %v331_v13 = vld [vmem:[%s1419_s18 + $0xc8] sm:$0xff]   ;;  %v335_v14 = vld [vmem:[%s1419_s18 + $0xd0] sm:$0xff]  }
  0x14   : > { %296 = vst [vmem:[%s259_s19 + $0x20] sm:$0xff] %v295_v4   ;;  %v339_v15 = vld [vmem:[%s1419_s18 + $0xd8] sm:$0xff]  }
  0x15   : > { %300 = vst [vmem:[%s259_s19 + $0x28] sm:$0xff] %v299_v5  }
  0x16   : > { %304 = vst [vmem:[%s259_s19 + $0x30] sm:$0xff] %v303_v6  }
  0x17   : > { %308 = vst [vmem:[%s259_s19 + $0x38] sm:$0xff] %v307_v7  }
  0x18   : > { %312 = vst [vmem:[%s259_s19 + $0x40] sm:$0xff] %v311_v8  }
  0x19   : > { %316 = vst [vmem:[%s259_s19 + $0x48] sm:$0xff] %v315_v9  }
  0x1a   : > { %320 = vst [vmem:[%s259_s19 + $0x50] sm:$0xff] %v319_v10  }
  0x1b   : > { %324 = vst [vmem:[%s259_s19 + $0x58] sm:$0xff] %v323_v11  }
  0x1c   : > { %328 = vst [vmem:[%s259_s19 + $0x60] sm:$0xff] %v327_v12  }
  0x1d   : > { %332 = vst [vmem:[%s259_s19 + $0x68] sm:$0xff] %v331_v13  }
  0x1e   : > { %336 = vst [vmem:[%s259_s19 + $0x70] sm:$0xff] %v335_v14  }
  0x1f   : > { %340 = vst [vmem:[%s259_s19 + $0x78] sm:$0xff] %v339_v15  }
  0x20 PF: > { %p1159_p5 = scmp.ge.s32.totalorder %s1337_s29, 1  ;;  %p429_p6 = scmp.lt.s32.totalorder %s1337_s29, 3 }
  0x22   : > { %p430_p7 = pnand %p1159_p5, %p429_p6 }
  0x23   : > { %s436_s20 = sand.u32 (!%p430_p7), 1, %s1329_s27   ;;  %p469_p8 = scmp.lt.s32.totalorder (!%p430_p7), %s1152_s30, 1 }
  0x24   : > { %433 = sbr.rel (%p430_p7) target bundleno = 620 (0x26c), region = 89  ;;  %s1160_s21 = sshll.u32 (!%p430_p7), %s436_s20, 7 }
  0x25   : > { %s1440_s22 = scalar_lea.vmem (!%p430_p7), [#allocation2], %s1160_s21 }
  0x29   : > { %v1443_v16 = vld [vmem:[%s1440_s22] sm:$0xff]   ;;  %v1446_v17 = vld [vmem:[%s1440_s22 + $0x8] sm:$0xff]   ;;  %v1449_v18 = vld [vmem:[%s1440_s22 + $0x10] sm:$0xff]   ;;  %vm491_vm0 = vcmask 130048   ;;  %vm633_vm1 = vcmask 125952   ;;  %s1837_s30 = smov (!%p469_p8, %s1152_s30), 1 }
  0x2a   : > { %v1202_v19 = vunpack.c.l.bf16 %v1443_v16  ;;  %v1203_v20 = vunpack.c.h.bf16 %v1443_v16  ;;  %v1206_v21 = vunpack.c.l.bf16 %v1446_v17  ;;  %v1207_v22 = vunpack.c.h.bf16 %v1446_v17  ;;  %v1456_v23 = vld [vmem:[%s1440_s22 + $0x18] sm:$0xff]   ;;  %v1460_v25 = vld [vmem:[%s1440_s22 + $0x20] sm:$0xff]   ;;  %v1463_v26 = vld [vmem:[%s1440_s22 + $0x28] sm:$0xff]   ;;  %s1198_s20 = sshll.u32 %s1837_s30, 5 }
  0x2b   : > { %v1210_v24 = vunpack.c.l.bf16 %v1449_v18  ;;  %v1211_v30 = vunpack.c.h.bf16 %v1449_v18  ;;  %v1816_v31 = vunpack.c.l.bf16 %v1456_v23  ;;  %v1815_v32 = vunpack.c.h.bf16 %v1456_v23  ;;  %v1478_v34 = vld [vmem:[%s1440_s22 + $0x30] sm:$0xff]   ;;  %v1487_v39 = vld [vmem:[%s1440_s22 + $0x38] sm:$0xff]   ;;  %v1502_v47 = vld [vmem:[%s1440_s22 + $0x40] sm:$0xff]   ;;  %s473_s23 = scalar_lea.vmem %s1810_s8, %s1198_s20 }
  0x2c   : > { %v492_v27 = vsel %vm491_vm0, %v1202_v19, 0.0  ;;  %v493_v28 = vsel %vm491_vm0, %v1203_v20, 0.0  ;;  %v495_v29 = vsel %vm491_vm0, %v1206_v21, 0.0  ;;  %v497_v35 = vsel %vm491_vm0, %v1207_v22, 0.0  ;;  %v1509_v52 = vld [vmem:[%s1440_s22 + $0x48] sm:$0xff]   ;;  %v1526_v61 = vld [vmem:[%s1440_s22 + $0x50] sm:$0xff]  }
  0x2d   : > { %v494_v33 = vadd.f32 %v493_v28, %v492_v27  ;;  %v1218_v36 = vunpack.c.l.bf16 %v1460_v25  ;;  %v1219_v37 = vunpack.c.h.bf16 %v1460_v25  ;;  %v1222_v38 = vunpack.c.l.bf16 %v1463_v26  ;;  %v1541_v6 = vld [vmem:[%s1440_s22 + $0x58] sm:$0xff]   ;;  %v1544_v7 = vld [vmem:[%s1440_s22 + $0x60] sm:$0xff]   ;;  %v1558_v27 = vld [vmem:[%s1440_s22 + $0x68] sm:$0xff]  }
  0x2e   : > { %v499_v41 = vsel %vm491_vm0, %v1210_v24, 0.0  ;;  %v1223_v42 = vunpack.c.h.bf16 %v1463_v26  ;;  %v1226_v43 = vunpack.c.l.bf16 %v1478_v34  ;;  %v1227_v44 = vunpack.c.h.bf16 %v1478_v34 }
  0x2f   : > { %v496_v40 = vadd.f32 %v495_v29, %v494_v33  ;;  %v530_v45 = vsel %vm491_vm0, %v1218_v36, 0.0  ;;  %v531_v46 = vsel %vm491_vm0, %v1219_v37, 0.0  ;;  %v1812_v49 = vunpack.c.l.bf16 %v1487_v39 }
  0x30   : > { %v532_v50 = vadd.f32 %v531_v46, %v530_v45  ;;  %v533_v51 = vsel %vm491_vm0, %v1222_v38, 0.0  ;;  %v501_v53 = vsel %vm491_vm0, %v1211_v30, 0.0  ;;  %v503_v54 = vsel %vm491_vm0, %v1816_v31, 0.0 }
  0x31   : > { %v498_v48 = vadd.f32 %v497_v35, %v496_v40  ;;  %v505_v55 = vsel %vm491_vm0, %v1815_v32, 0.0  ;;  %v535_v56 = vsel %vm491_vm0, %v1223_v42, 0.0  ;;  %v1234_v59 = vunpack.c.l.bf16 %v1502_v47 }
  0x32   : > { %v534_v58 = vadd.f32 %v533_v51, %v532_v50  ;;  %v1235_v60 = vunpack.c.h.bf16 %v1502_v47  ;;  %v1811_v62 = vunpack.c.h.bf16 %v1487_v39  ;;  %v537_v63 = vsel %vm491_vm0, %v1226_v43, 0.0 }
  0x33   : > { %v500_v57 = vadd.f32 %v499_v41, %v498_v48  ;;  %v1238_v0 = vunpack.c.l.bf16 %v1509_v52  ;;  %v1239_v1 = vunpack.c.h.bf16 %v1509_v52  ;;  %v539_v4 = vsel %vm491_vm0, %v1227_v44, 0.0  ;;  %v1570_v48 = vld [vmem:[%s1440_s22 + $0x70] sm:$0xff]  }
  0x34   : > { %v536_v3 = vadd.f32 %v535_v56, %v534_v58  ;;  %v541_v5 = vsel %vm491_vm0, %v1812_v49, 0.0  ;;  %v1242_v8 = vunpack.c.l.bf16 %v1526_v61  ;;  %v569_v9 = vsel %vm491_vm0, %v1234_v59, 0.0 }
  0x35   : > { %v502_v2 = vadd.f32 %v501_v53, %v500_v57  ;;  %v570_v10 = vsel %vm491_vm0, %v1235_v60, 0.0  ;;  %v572_v11 = vsel %vm491_vm0, %v1238_v0, 0.0  ;;  %v1820_v14 = vunpack.c.h.bf16 %v1526_v61 }
  0x36   : > { %v538_v13 = vadd.f32 %v537_v63, %v536_v3  ;;  %v571_v15 = vadd.f32 %v570_v10, %v569_v9  ;;  %v543_v28 = vsel %vm491_vm0, %v1811_v62, 0.0  ;;  %v1814_v29 = vunpack.c.l.bf16 %v1541_v6 }
  0x37   : > { %v504_v12 = vadd.f32 %v503_v54, %v502_v2  ;;  %v574_v33 = vsel %vm491_vm0, %v1239_v1, 0.0  ;;  %v1250_v35 = vunpack.c.l.bf16 %v1544_v7  ;;  %v1251_v46 = vunpack.c.h.bf16 %v1544_v7 }
  0x38   : > { %v540_v41 = vadd.f32 %v539_v4, %v538_v13  ;;  %v573_v45 = vadd.f32 %v572_v11, %v571_v15  ;;  %v1813_v50 = vunpack.c.h.bf16 %v1541_v6  ;;  %v576_v51 = vsel %vm491_vm0, %v1242_v8, 0.0  ;;  %v1592_v11 = vld [vmem:[%s1440_s22 + $0x78] sm:$0xff]  }
  0x39   : > { %v506_v40 = vadd.f32 %v505_v55, %v504_v12  ;;  %v1254_v53 = vunpack.c.l.bf16 %v1558_v27  ;;  %v1255_v54 = vunpack.c.h.bf16 %v1558_v27  ;;  %v578_v58 = vsel %vm491_vm0, %v1820_v14, 0.0 }
  0x3a   : > { %v542_v57 = vadd.f32 %v541_v5, %v540_v41  ;;  %v575_v55 = vadd.f32 %v574_v33, %v573_v45  ;;  %v1819_v63 = vunpack.c.l.bf16 %v1570_v48  ;;  %v608_v2 = vsel %vm491_vm0, %v1250_v35, 0.0 }
  0x3b   : > { %v507_v56 = vrot.slane %v506_v40, 4  ;;  %v609_v3 = vsel %vm491_vm0, %v1251_v46, 0.0  ;;  %v611_v4 = vsel %vm491_vm0, %v1254_v53, 0.0  ;;  %v580_v13 = vsel %vm491_vm0, %v1814_v29, 0.0 }
  0x3c   : > { %v544_v9 = vadd.f32 %v543_v28, %v542_v57  ;;  %v577_v10 = vadd.f32 %v576_v51, %v575_v55  ;;  %v610_v12 = vadd.f32 %v609_v3, %v608_v2  ;;  %v1817_v15 = vunpack.c.h.bf16 %v1570_v48 }
  0x3d   : > { %v508_v5 = vadd.f32 %v507_v56, %v506_v40  ;;  %v613_v33 = vsel %vm491_vm0, %v1255_v54, 0.0  ;;  %v582_v28 = vsel %vm491_vm0, %v1813_v50, 0.0  ;;  %v1818_v40 = vunpack.c.l.bf16 %v1592_v11 }
  0x3e   : > { %v545_v45 = vrot.slane %v544_v9, 4  ;;  %v579_v62 = vadd.f32 %v578_v58, %v577_v10  ;;  %v612_v49 = vadd.f32 %v611_v4, %v610_v12  ;;  %v615_v51 = vsel %vm491_vm0, %v1819_v63, 0.0 }
  0x3f   : > { %v509_v41 = vrot.slane %v508_v5, 2  ;;  %v640_v56 = vlaneseq  ;;  %v1821_v3 = vunpack.c.h.bf16 %v1592_v11  ;;  %v617_v58 = vsel %vm491_vm0, %v1817_v15, 0.0 }
  0x40   : > { %v546_v57 = vadd.f32 %v545_v45, %v544_v9  ;;  %v581_v55 = vadd.f32 %v580_v13, %v579_v62  ;;  %v614_v2 = vadd.f32 %v613_v33, %v612_v49  ;;  %v619_v32 = vsel %vm491_vm0, %v1818_v40, 0.0 }
  0x41   : > { %v641_v4 = vshrl.u32 %v640_v56, 7  ;;  %v510_v10 = vadd.f32 %v509_v41, %v508_v5  ;;  %v621_v49 = vsel %vm491_vm0, %v1821_v3, 0.0  ;;  %vm1082_vm2 = vcmask 60416  }
  0x42   : > { %v547_v12 = vrot.slane %v546_v57, 2  ;;  %v583_v50 = vadd.f32 %v582_v28, %v581_v55  ;;  %v616_v29 = vadd.f32 %v615_v51, %v614_v2 }
  0x43   : > { %1307 = vset.pattern.permute.xlu0 %v641_v4  ;;  %v511_v13 = vrot.slane %v510_v10, 1 }
  0x44   : > { %v548_v31 = vadd.f32 %v547_v12, %v546_v57  ;;  %v584_v9 = vrot.slane %v583_v50, 4  ;;  %v618_v62 = vadd.f32 %v617_v58, %v616_v29 }
  0x45   : > { %v512_v28 = vadd.f32 %v511_v13, %v510_v10 }
  0x46   : > { %v549_v33 = vrot.slane %v548_v31, 1  ;;  %v585_v45 = vadd.f32 %v584_v9, %v583_v50  ;;  %v620_v56 = vadd.f32 %v619_v32, %v618_v62  ;;  %v631_v32 = vld [vmem:[%s1803_s1] sm:$0xf] }
  0x48   : > { %v586_v5 = vrot.slane %v585_v45, 2  ;;  %v622_v41 = vadd.f32 %v621_v49, %v620_v56  ;;  %v550_v51 = vadd.f32 %v549_v33, %v548_v31 }
  0x4a   : > { %v587_v55 = vadd.f32 %v586_v5, %v585_v45  ;;  %v623_v2 = vrot.slane %v622_v41, 4  ;;  %v551_v4 = vadd.f32 %v550_v51, %v512_v28  ;;  %v663_v51 = vld [vmem:[%s1806_s4] sm:$0x1] }
  0x4c   : > { %v588_v15 = vrot.slane %v587_v55, 1  ;;  %v624_v40 = vadd.f32 %v623_v2, %v622_v41  ;;  %v1199_v2 = vld [vmem:[%s1809_s7] sm:$0xff] }
  0x4d   : > { %1052 = vmatpush.bf16.msra.mxu0 %v1199_v2  ;;  %1279 = vmatpush.bf16.msra.mxu1 %v1199_v2 }
  0x4e   : > { %v589_v57 = vadd.f32 %v588_v15, %v587_v55  ;;  %v625_v12 = vrot.slane %v624_v40, 2  ;;  %v1310_v15 = vld [vmem:[%s1804_s2] ss:$0 sm:$0xff]  ;;  %1280 = vmatpush.bf16.msra.mxu2 %v1199_v2  ;;  %1281 = vmatpush.bf16.msra.mxu3 %v1199_v2 }
  0x50   : > { %v626_v29 = vadd.f32 %v625_v12, %v624_v40  ;;  %v590_v58 = vadd.f32 %v589_v57, %v551_v4  ;;  %v1339_v40 = vmov 0  }
  0x51   : > { %1308 = vset.pattern.permute.xlu1 %v1339_v40 }
  0x52   : > { %v627_v63 = vrot.slane %v626_v29, 1 }
  0x54   : > { %v628_v14 = vadd.f32 %v627_v63, %v626_v29 }
  0x56   : > { %v629_v3 = vadd.f32 %v628_v14, %v590_v58 }
  0x58   : > { %v630_v50 = vmul.f32 0.00390625, %v629_v3  ;;  %v649_v3 = vld [vmem:[%s1805_s3] sm:$0xf] }
  0x5a   : > { %v632_v10 = vmul.f32 %v631_v32, %v630_v50  ;;  %v673_v32 = vld [vmem:[%s1808_s6] sm:$0x1] }
  0x5b   : > { %v670_v50 = vld [vmem:[%s1807_s5] sm:$0x1] }
  0x5c   : > { %v634_v31 = vsel %vm633_vm1, %v632_v10, 0.0  ;;  %v674_v10 = vpack.c.bf16 %v673_v32, %v673_v32 }
  0x5d   : > { %635 = vadd.xlane.f32.xlu0 %v634_v31 }
  0x71   : > { %644 = vperm.xlu0 %1307, %v1310_v15  }
  0x79   : > { %1309 = vset.pattern.permute.xlu0 %v1339_v40  ;;  %v697_v40 = vpack.i.b16 %v674_v10, %v674_v10 }
  0xd0   : > { %v636_v63 = vpop.xlane.xlu0 %635 }
  0xe3   : > { %v645_v14 = vpop.permute.xlu0 %644 }
  0xe4   : > { %v647_v9 = vadd.f32 %v645_v14, %v636_v63 }
  0xe6   : > { %v648_v62 = vmax.f32 %v647_v9, 0.0  ;;  %v699_v9 = vperm.slane %v697_v40, 0 }
  0xe8   : > { %652 = vperm.xlu1 %1308, %v648_v62  }
 0x15a   : > { %v653_v49 = vpop.permute.xlu1 %652 }
 0x15b   : > { %v655_v13 = vmul.f32 %v653_v49, %v649_v3  ;;  %v1643_v49 = vunpack.c.l.bf16 %v699_v9 }
 0x15d   : > { %v656_v33 = vsel %vm633_vm1, %v655_v13, 0.0 }
 0x15e   : > { %v657_v45 = vrot.slane %v656_v33, 4 }
 0x160   : > { %v658_v56 = vadd.f32 %v657_v45, %v656_v33 }
 0x162   : > { %v659_v5 = vrot.slane %v658_v56, 2 }
 0x164   : > { %v660_v41 = vadd.f32 %v659_v5, %v658_v56 }
 0x166   : > { %v661_v28 = vrot.slane %v660_v41, 1 }
 0x168   : > { %v662_v55 = vadd.f32 %v661_v28, %v660_v41 }
 0x16a   : > { %v664_v4 = vadd.f32 %v663_v51, %v662_v55 }
 0x16c   : > { %v665_v57 = vsub.f32 0.0, %v664_v4 }
 0x16e   : > { %v666_v12 = vmul.f32 1.442695, %v665_v57 }
 0x170   : > { %1311 = vpow2.f32 %v666_v12 }
 0x176   : > { %v1312_v29 = vpop.eup %1311 }
 0x177   : > { %v668_v58 = vadd.f32 1.0, %v1312_v29 }
 0x179   : > { %1313 = vrcp.f32 %v668_v58 }
 0x17f   : > { %v1314_v31 = vpop.eup %1313 }
 0x180   : > { %v671_v15 = vmul.f32 %v1314_v31, %v670_v50 }
 0x182   : > { %v672_v63 = vpack.c.bf16 %v671_v15, %v671_v15 }
 0x184   : > { %v676_v14 = vpack.i.b16 %v672_v63, %v672_v63 }
 0x186   : > { %v678_v62 = vperm.slane %v676_v14, 0 }
 0x188   : > { %v1641_v3 = vunpack.c.l.bf16 %v678_v62 }
 0x18a   : > { %v680_v13 = vmul.f32 %v1202_v19, %v1641_v3  ;;  %v681_v33 = vmul.f32 %v1203_v20, %v1641_v3  ;;  %v757_v45 = vmul.f32 %v1218_v36, %v1641_v3  ;;  %v758_v56 = vmul.f32 %v1219_v37, %v1641_v3 }
 0x18b   : > { %v837_v5 = vmul.f32 %v1234_v59, %v1641_v3  ;;  %v838_v19 = vmul.f32 %v1235_v60, %v1641_v3  ;;  %v917_v16 = vmul.f32 %v1250_v35, %v1641_v3  ;;  %v918_v20 = vmul.f32 %v1251_v46, %v1641_v3 }
 0x18c   : > { %v688_v36 = vpack.c.bf16 %v680_v13, %v680_v13  ;;  %v689_v41 = vpack.c.bf16 %v681_v33, %v681_v33  ;;  %v765_v25 = vpack.c.bf16 %v757_v45, %v757_v45  ;;  %v766_v37 = vpack.c.bf16 %v758_v56, %v758_v56 }
 0x18d   : > { %v845_v28 = vpack.c.bf16 %v837_v5, %v837_v5  ;;  %v846_v51 = vpack.c.bf16 %v838_v19, %v838_v19  ;;  %v925_v55 = vpack.c.bf16 %v917_v16, %v917_v16  ;;  %v926_v59 = vpack.c.bf16 %v918_v20, %v918_v20 }
 0x18e   : > { %v700_v2 = vunpack.c.l.bf16 %v688_v36  ;;  %v701_v4 = vunpack.c.l.bf16 %v689_v41  ;;  %v773_v47 = vunpack.c.l.bf16 %v765_v25  ;;  %v774_v60 = vunpack.c.l.bf16 %v766_v37 }
 0x18f   : > { %v853_v57 = vunpack.c.l.bf16 %v845_v28  ;;  %v854_v12 = vunpack.c.l.bf16 %v846_v51  ;;  %v933_v29 = vunpack.c.l.bf16 %v925_v55  ;;  %v934_v35 = vunpack.c.l.bf16 %v926_v59 }
 0x190   : > { %v709_v58 = vadd.f32 %v1643_v49, %v700_v2  ;;  %v710_v7 = vadd.f32 %v1643_v49, %v701_v4  ;;  %v781_v46 = vadd.f32 %v773_v47, %v1643_v49  ;;  %v782_v32 = vadd.f32 %v774_v60, %v1643_v49 }
 0x191   : > { %v861_v50 = vadd.f32 %v853_v57, %v1643_v49  ;;  %v862_v10 = vadd.f32 %v854_v12, %v1643_v49  ;;  %v941_v31 = vadd.f32 %v933_v29, %v1643_v49  ;;  %v942_v15 = vadd.f32 %v934_v35, %v1643_v49 }
 0x192   : > { %v733_v40 = vmax.f32 %v709_v58, 0.0  ;;  %v734_v63 = vmax.f32 %v710_v7, 0.0  ;;  %v805_v14 = vmax.f32 %v781_v46, 0.0  ;;  %v806_v9 = vmax.f32 %v782_v32, 0.0 }
 0x193   : > { %v885_v62 = vmax.f32 %v861_v50, 0.0  ;;  %v886_v13 = vmax.f32 %v862_v10, 0.0  ;;  %v965_v33 = vmax.f32 %v941_v31, 0.0  ;;  %v966_v45 = vmax.f32 %v942_v15, 0.0 }
 0x194   : > { %v741_v56 = vpack.c.bf16 %v733_v40, %v733_v40  ;;  %v742_v5 = vpack.c.bf16 %v734_v63, %v734_v63  ;;  %v813_v19 = vpack.c.bf16 %v805_v14, %v805_v14  ;;  %v814_v16 = vpack.c.bf16 %v806_v9, %v806_v9 }
 0x195   : > { %v893_v20 = vpack.c.bf16 %v885_v62, %v885_v62  ;;  %v894_v36 = vpack.c.bf16 %v886_v13, %v886_v13  ;;  %v973_v41 = vpack.c.bf16 %v965_v33, %v965_v33  ;;  %v974_v25 = vpack.c.bf16 %v966_v45, %v966_v45 }
 0x196   : > { %v749_v37 = vunpack.c.l.bf16 %v741_v56  ;;  %v750_v28 = vunpack.c.l.bf16 %v742_v5  ;;  %v821_v51 = vunpack.c.l.bf16 %v813_v19  ;;  %v822_v55 = vunpack.c.l.bf16 %v814_v16 }
 0x197   : > { %v901_v59 = vunpack.c.l.bf16 %v893_v20  ;;  %v902_v2 = vunpack.c.l.bf16 %v894_v36  ;;  %v981_v4 = vunpack.c.l.bf16 %v973_v41  ;;  %v982_v47 = vunpack.c.l.bf16 %v974_v25 }
 0x198   : > { %v829_v60 = vadd.f32 %v821_v51, %v749_v37  ;;  %v830_v57 = vadd.f32 %v822_v55, %v750_v28  ;;  %v682_v12 = vmul.f32 %v1206_v21, %v1641_v3  ;;  %v683_v29 = vmul.f32 %v1207_v22, %v1641_v3 }
 0x199   : > { %v759_v35 = vmul.f32 %v1222_v38, %v1641_v3  ;;  %v760_v58 = vmul.f32 %v1223_v42, %v1641_v3  ;;  %v839_v7 = vmul.f32 %v1238_v0, %v1641_v3  ;;  %v840_v21 = vmul.f32 %v1239_v1, %v1641_v3 }
 0x19a   : > { %v909_v46 = vadd.f32 %v901_v59, %v829_v60  ;;  %v910_v32 = vadd.f32 %v902_v2, %v830_v57  ;;  %v690_v17 = vpack.c.bf16 %v682_v12, %v682_v12  ;;  %v691_v22 = vpack.c.bf16 %v683_v29, %v683_v29 }
 0x19b   : > { %v767_v50 = vpack.c.bf16 %v759_v35, %v759_v35  ;;  %v768_v10 = vpack.c.bf16 %v760_v58, %v760_v58  ;;  %v847_v31 = vpack.c.bf16 %v839_v7, %v839_v7  ;;  %v848_v38 = vpack.c.bf16 %v840_v21, %v840_v21 }
 0x19c   : > { %v989_v15 = vadd.f32 %v981_v4, %v909_v46  ;;  %v990_v40 = vadd.f32 %v982_v47, %v910_v32  ;;  %v702_v26 = vunpack.c.l.bf16 %v690_v17  ;;  %v703_v42 = vunpack.c.l.bf16 %v691_v22 }
 0x19d   : > { %v775_v63 = vunpack.c.l.bf16 %v767_v50  ;;  %v776_v14 = vunpack.c.l.bf16 %v768_v10  ;;  %v855_v9 = vunpack.c.l.bf16 %v847_v31  ;;  %v856_v0 = vunpack.c.l.bf16 %v848_v38 }
 0x19e   : > { %v997_v62 = vpack.c.bf16 %v989_v15, %v989_v15  ;;  %v998_v13 = vpack.c.bf16 %v990_v40, %v990_v40  ;;  %v711_v52 = vadd.f32 %v1643_v49, %v702_v26  ;;  %v712_v1 = vadd.f32 %v1643_v49, %v703_v42 }
 0x19f   : > { %v783_v33 = vadd.f32 %v775_v63, %v1643_v49  ;;  %v784_v45 = vadd.f32 %v776_v14, %v1643_v49  ;;  %v863_v56 = vadd.f32 %v855_v9, %v1643_v49  ;;  %v864_v5 = vadd.f32 %v856_v0, %v1643_v49 }
 0x1a0   : > { %v1015_v19 = vunpack.c.l.b16 %v997_v62  ;;  %v1016_v16 = vunpack.c.l.b16 %v998_v13  ;;  %v735_v20 = vmax.f32 %v711_v52, 0.0  ;;  %v736_v36 = vmax.f32 %v712_v1, 0.0 }
 0x1a1   : > { %v807_v41 = vmax.f32 %v783_v33, 0.0  ;;  %v808_v25 = vmax.f32 %v784_v45, 0.0  ;;  %v887_v37 = vmax.f32 %v863_v56, 0.0  ;;  %v888_v28 = vmax.f32 %v864_v5, 0.0 }
 0x1a2   : > { %v1023_v51 = vpack.c.b16 %v1016_v16, %v1015_v19  ;;  %v743_v55 = vpack.c.bf16 %v735_v20, %v735_v20  ;;  %v744_v59 = vpack.c.bf16 %v736_v36, %v736_v36  ;;  %v919_v2 = vmul.f32 %v1254_v53, %v1641_v3 }
 0x1a3   : > { %v815_v4 = vpack.c.bf16 %v807_v41, %v807_v41  ;;  %v816_v47 = vpack.c.bf16 %v808_v25, %v808_v25  ;;  %v895_v60 = vpack.c.bf16 %v887_v37, %v887_v37  ;;  %v896_v57 = vpack.c.bf16 %v888_v28, %v888_v28 }
 0x1a4   : > { %1191 = vmatmul.msk.bf16.vlgmr.msra.gmra.mxu0 %vm491_vm0, %v1023_v51  ;;  %v751_v12 = vunpack.c.l.bf16 %v743_v55  ;;  %v752_v29 = vunpack.c.l.bf16 %v744_v59  ;;  %v920_v35 = vmul.f32 %v1255_v54, %v1641_v3  ;;  %v927_v58 = vpack.c.bf16 %v919_v2, %v919_v2 }
 0x1a5   : > { %v823_v7 = vunpack.c.l.bf16 %v815_v4  ;;  %v824_v21 = vunpack.c.l.bf16 %v816_v47  ;;  %v903_v46 = vunpack.c.l.bf16 %v895_v60  ;;  %v904_v32 = vunpack.c.l.bf16 %v896_v57 }
 0x1a6   : > { %v928_v17 = vpack.c.bf16 %v920_v35, %v920_v35  ;;  %v935_v22 = vunpack.c.l.bf16 %v927_v58  ;;  %v684_v53 = vmul.f32 %v1210_v24, %v1641_v3  ;;  %v685_v50 = vmul.f32 %v1211_v30, %v1641_v3 }
 0x1a7   : > { %v831_v10 = vadd.f32 %v823_v7, %v751_v12  ;;  %v832_v31 = vadd.f32 %v824_v21, %v752_v29  ;;  %v761_v27 = vmul.f32 %v1226_v43, %v1641_v3  ;;  %v762_v54 = vmul.f32 %v1227_v44, %v1641_v3 }
 0x1a8   : > { %v936_v38 = vunpack.c.l.bf16 %v928_v17  ;;  %v943_v15 = vadd.f32 %v935_v22, %v1643_v49  ;;  %v692_v40 = vpack.c.bf16 %v684_v53, %v684_v53  ;;  %v693_v26 = vpack.c.bf16 %v685_v50, %v685_v50 }
 0x1a9   : > { %v911_v24 = vadd.f32 %v903_v46, %v831_v10  ;;  %v912_v42 = vadd.f32 %v904_v32, %v832_v31  ;;  %v769_v63 = vpack.c.bf16 %v761_v27, %v761_v27  ;;  %v770_v18 = vpack.c.bf16 %v762_v54, %v762_v54 }
 0x1aa   : > { %v944_v30 = vadd.f32 %v936_v38, %v1643_v49  ;;  %v967_v14 = vmax.f32 %v943_v15, 0.0  ;;  %v704_v9 = vunpack.c.l.bf16 %v692_v40  ;;  %v705_v0 = vunpack.c.l.bf16 %v693_v26 }
 0x1ab   : > { %v777_v62 = vunpack.c.l.bf16 %v769_v63  ;;  %v778_v43 = vunpack.c.l.bf16 %v770_v18  ;;  %v841_v34 = vmul.f32 %v1242_v8, %v1641_v3  ;;  %v1822_v44 = vunpack.c.h.bf16 %v1526_v61 }
 0x1ac   : > { %v968_v52 = vmax.f32 %v944_v30, 0.0  ;;  %v975_v1 = vpack.c.bf16 %v967_v14, %v967_v14  ;;  %v713_v33 = vadd.f32 %v1643_v49, %v704_v9  ;;  %v714_v45 = vadd.f32 %v1643_v49, %v705_v0 }
 0x1ad   : > { %v842_v13 = vmul.f32 %v1822_v44, %v1641_v3  ;;  %v785_v56 = vadd.f32 %v777_v62, %v1643_v49  ;;  %v786_v5 = vadd.f32 %v778_v43, %v1643_v49  ;;  %v849_v19 = vpack.c.bf16 %v841_v34, %v841_v34 }
 0x1ae   : > { %v976_v20 = vpack.c.bf16 %v968_v52, %v968_v52  ;;  %v983_v36 = vunpack.c.l.bf16 %v975_v1  ;;  %v737_v41 = vmax.f32 %v713_v33, 0.0  ;;  %v738_v8 = vmax.f32 %v714_v45, 0.0 }
 0x1af   : > { %v850_v16 = vpack.c.bf16 %v842_v13, %v842_v13  ;;  %v809_v25 = vmax.f32 %v785_v56, 0.0  ;;  %v810_v37 = vmax.f32 %v786_v5, 0.0  ;;  %v857_v61 = vunpack.c.l.bf16 %v849_v19 }
 0x1b0   : > { %v984_v51 = vunpack.c.l.bf16 %v976_v20  ;;  %v991_v55 = vadd.f32 %v983_v36, %v911_v24  ;;  %v745_v59 = vpack.c.bf16 %v737_v41, %v737_v41  ;;  %v746_v2 = vpack.c.bf16 %v738_v8, %v738_v8 }
 0x1b1   : > { %v858_v28 = vunpack.c.l.bf16 %v850_v16  ;;  %v817_v4 = vpack.c.bf16 %v809_v25, %v809_v25  ;;  %v818_v47 = vpack.c.bf16 %v810_v37, %v810_v37  ;;  %v865_v60 = vadd.f32 %v857_v61, %v1643_v49 }
 0x1b2   : > { %v992_v12 = vadd.f32 %v984_v51, %v912_v42  ;;  %v999_v29 = vpack.c.bf16 %v991_v55, %v991_v55  ;;  %v753_v35 = vunpack.c.l.bf16 %v745_v59  ;;  %v754_v58 = vunpack.c.l.bf16 %v746_v2 }
 0x1b3   : > { %v866_v57 = vadd.f32 %v858_v28, %v1643_v49  ;;  %v825_v7 = vunpack.c.l.bf16 %v817_v4  ;;  %v826_v21 = vunpack.c.l.bf16 %v818_v47  ;;  %v889_v46 = vmax.f32 %v865_v60, 0.0 }
 0x1b4   : > { %v1000_v17 = vpack.c.bf16 %v992_v12, %v992_v12  ;;  %v1017_v22 = vunpack.c.l.b16 %v999_v29  ;;  %v1823_v53 = vunpack.c.l.bf16 %v1570_v48  ;;  %v1824_v10 = vunpack.c.h.bf16 %v1570_v48 }
 0x1b5   : > { %v890_v32 = vmax.f32 %v866_v57, 0.0  ;;  %v833_v27 = vadd.f32 %v825_v7, %v753_v35  ;;  %v834_v54 = vadd.f32 %v826_v21, %v754_v58  ;;  %v897_v38 = vpack.c.bf16 %v889_v46, %v889_v46 }
 0x1b6   : > { %v921_v50 = vmul.f32 %v1823_v53, %v1641_v3  ;;  %v922_v31 = vmul.f32 %v1824_v10, %v1641_v3  ;;  %v1018_v40 = vunpack.c.l.b16 %v1000_v17  ;;  %v1825_v42 = vunpack.c.l.bf16 %v1456_v23 }
 0x1b7   : > { %v898_v15 = vpack.c.bf16 %v890_v32, %v890_v32  ;;  %v905_v18 = vunpack.c.l.bf16 %v897_v38  ;;  %v1826_v14 = vunpack.c.h.bf16 %v1456_v23  ;;  %v1827_v48 = vunpack.c.l.bf16 %v1487_v39 }
 0x1b8   : > { %v929_v26 = vpack.c.bf16 %v921_v50, %v921_v50  ;;  %v930_v24 = vpack.c.bf16 %v922_v31, %v922_v31  ;;  %v686_v63 = vmul.f32 %v1825_v42, %v1641_v3  ;;  %v1024_v62 = vpack.c.b16 %v1018_v40, %v1017_v22 }
 0x1b9   : > { %v906_v30 = vunpack.c.l.bf16 %v898_v15  ;;  %v687_v9 = vmul.f32 %v1826_v14, %v1641_v3  ;;  %v763_v0 = vmul.f32 %v1827_v48, %v1641_v3  ;;  %v913_v13 = vadd.f32 %v905_v18, %v833_v27 }
 0x1ba   : > { %v937_v43 = vunpack.c.l.bf16 %v929_v26  ;;  %v938_v34 = vunpack.c.l.bf16 %v930_v24  ;;  %v694_v44 = vpack.c.bf16 %v686_v63, %v686_v63  ;;  %v1828_v33 = vunpack.c.h.bf16 %v1487_v39  ;;  %1192 = vmatmul.msk.bf16.vlgmr.msra.gmra.mxu1 %vm491_vm0, %v1024_v62 }
 0x1bb   : > { %v914_v52 = vadd.f32 %v906_v30, %v834_v54  ;;  %v695_v1 = vpack.c.bf16 %v687_v9, %v687_v9  ;;  %v771_v19 = vpack.c.bf16 %v763_v0, %v763_v0  ;;  %v1829_v36 = vunpack.c.l.bf16 %v1541_v6 }
 0x1bc   : > { %v764_v45 = vmul.f32 %v1828_v33, %v1641_v3  ;;  %v945_v23 = vadd.f32 %v937_v43, %v1643_v49  ;;  %v946_v56 = vadd.f32 %v938_v34, %v1643_v49  ;;  %v706_v5 = vunpack.c.l.bf16 %v694_v44 }
 0x1bd   : > { %v707_v16 = vunpack.c.l.bf16 %v695_v1  ;;  %v843_v41 = vmul.f32 %v1829_v36, %v1641_v3  ;;  %v1830_v8 = vunpack.c.h.bf16 %v1541_v6  ;;  %v779_v28 = vunpack.c.l.bf16 %v771_v19 }
 0x1be   : > { %v772_v20 = vpack.c.bf16 %v764_v45, %v764_v45  ;;  %v969_v39 = vmax.f32 %v945_v23, 0.0  ;;  %v970_v37 = vmax.f32 %v946_v56, 0.0  ;;  %v715_v61 = vadd.f32 %v1643_v49, %v706_v5 }
 0x1bf   : > { %v844_v25 = vmul.f32 %v1830_v8, %v1641_v3  ;;  %v716_v51 = vadd.f32 %v1643_v49, %v707_v16  ;;  %v851_v59 = vpack.c.bf16 %v843_v41, %v843_v41  ;;  %v787_v57 = vadd.f32 %v779_v28, %v1643_v49 }
 0x1c0   : > { %v780_v55 = vunpack.c.l.bf16 %v772_v20  ;;  %v977_v4 = vpack.c.bf16 %v969_v39, %v969_v39  ;;  %v978_v47 = vpack.c.bf16 %v970_v37, %v970_v37  ;;  %v739_v60 = vmax.f32 %v715_v61, 0.0 }
 0x1c1   : > { %v852_v2 = vpack.c.bf16 %v844_v25, %v844_v25  ;;  %v740_v12 = vmax.f32 %v716_v51, 0.0  ;;  %v859_v6 = vunpack.c.l.bf16 %v851_v59  ;;  %v811_v21 = vmax.f32 %v787_v57, 0.0 }
 0x1c2   : > { %v788_v29 = vadd.f32 %v780_v55, %v1643_v49  ;;  %v985_v58 = vunpack.c.l.bf16 %v977_v4  ;;  %v986_v7 = vunpack.c.l.bf16 %v978_v47  ;;  %v747_v46 = vpack.c.bf16 %v739_v60, %v739_v60 }
 0x1c3   : > { %v860_v35 = vunpack.c.l.bf16 %v852_v2  ;;  %v867_v17 = vadd.f32 %v859_v6, %v1643_v49  ;;  %v819_v10 = vpack.c.bf16 %v811_v21, %v811_v21  ;;  %v748_v31 = vpack.c.bf16 %v740_v12, %v740_v12 }
 0x1c4   : > { %v812_v32 = vmax.f32 %v788_v29, 0.0  ;;  %v993_v53 = vadd.f32 %v985_v58, %v913_v13  ;;  %v994_v50 = vadd.f32 %v986_v7, %v914_v52  ;;  %v1831_v40 = vunpack.c.l.bf16 %v1592_v11 }
 0x1c5   : > { %v868_v22 = vadd.f32 %v860_v35, %v1643_v49  ;;  %v891_v15 = vmax.f32 %v867_v17, 0.0  ;;  %v755_v24 = vunpack.c.l.bf16 %v747_v46  ;;  %v1832_v63 = vunpack.c.h.bf16 %v1592_v11 }
 0x1c6   : > { %v820_v27 = vpack.c.bf16 %v812_v32, %v812_v32  ;;  %v1001_v54 = vpack.c.bf16 %v993_v53, %v993_v53  ;;  %v1002_v38 = vpack.c.bf16 %v994_v50, %v994_v50  ;;  %v923_v26 = vmul.f32 %v1831_v40, %v1641_v3 }
 0x1c7   : > { %v892_v42 = vmax.f32 %v868_v22, 0.0  ;;  %v924_v18 = vmul.f32 %v1832_v63, %v1641_v3  ;;  %v827_v9 = vunpack.c.l.bf16 %v819_v10  ;;  %v756_v0 = vunpack.c.l.bf16 %v748_v31 }
 0x1c8   : > { %v1019_v30 = vunpack.c.l.b16 %v1001_v54  ;;  %v1020_v14 = vunpack.c.l.b16 %v1002_v38  ;;  %v931_v48 = vpack.c.bf16 %v923_v26, %v923_v26  ;;  %v828_v62 = vunpack.c.l.bf16 %v820_v27 }
 0x1c9   : > { %v932_v43 = vpack.c.bf16 %v924_v18, %v924_v18  ;;  %v899_v44 = vpack.c.bf16 %v891_v15, %v891_v15  ;;  %v900_v52 = vpack.c.bf16 %v892_v42, %v892_v42  ;;  %v835_v33 = vadd.f32 %v827_v9, %v755_v24 }
 0x1ca   : > { %v1025_v34 = vpack.c.b16 %v1020_v14, %v1019_v30  ;;  %v939_v13 = vunpack.c.l.bf16 %v931_v48  ;;  %v836_v23 = vadd.f32 %v828_v62, %v756_v0 }
 0x1cb   : > { %v940_v1 = vunpack.c.l.bf16 %v932_v43  ;;  %v907_v3 = vunpack.c.l.bf16 %v899_v44  ;;  %v908_v5 = vunpack.c.l.bf16 %v900_v52 }
 0x1cc   : > { %1193 = vmatmul.msk.bf16.vlgmr.msra.gmra.mxu2 %vm491_vm0, %v1025_v34  ;;  %v947_v45 = vadd.f32 %v939_v13, %v1643_v49 }
 0x1cd   : > { %v948_v11 = vadd.f32 %v940_v1, %v1643_v49  ;;  %v915_v16 = vadd.f32 %v907_v3, %v835_v33  ;;  %v916_v36 = vadd.f32 %v908_v5, %v836_v23 }
 0x1ce   : > { %v971_v56 = vmax.f32 %v947_v45, 0.0 }
 0x1cf   : > { %v972_v19 = vmax.f32 %v948_v11, 0.0 }
 0x1d0   : > { %v979_v20 = vpack.c.bf16 %v971_v56, %v971_v56 }
 0x1d1   : > { %v980_v41 = vpack.c.bf16 %v972_v19, %v972_v19 }
 0x1d2   : > { %v987_v8 = vunpack.c.l.bf16 %v979_v20 }
 0x1d3   : > { %v988_v25 = vunpack.c.l.bf16 %v980_v41 }
 0x1d4   : > { %v995_v39 = vadd.f32 %v987_v8, %v915_v16 }
 0x1d5   : > { %v996_v37 = vadd.f32 %v988_v25, %v916_v36 }
 0x1d6   : > { %v1003_v61 = vpack.c.bf16 %v995_v39, %v995_v39 }
 0x1d7   : > { %v1004_v28 = vpack.c.bf16 %v996_v37, %v996_v37 }
 0x1d8   : > { %v1021_v51 = vunpack.c.l.b16 %v1003_v61 }
 0x1d9   : > { %v1022_v55 = vunpack.c.l.b16 %v1004_v28 }
 0x1db   : > { %v1026_v59 = vpack.c.b16 %v1022_v55, %v1021_v51 }
 0x1dd   : > { %1194 = vmatmul.msk.bf16.vlgmr.msra.gmra.mxu3 %vm491_vm0, %v1026_v59 }
 0x221   : > { %v1054_v49 = vpop.f32.mrf.mxu0 }
 0x222   : > { %v1074_v2 = vpack.c.bf16 %v1054_v49, %v1054_v49 }
 0x224   : > { %1083 = vst.msk [vmem:[%s473_s23] sm:$0xf] %vm1082_vm2, %v1074_v2 }
 0x229   : > { %v1056_v60 = vpop.f32.mrf.mxu0 }
 0x22a   : > { %v1075_v12 = vpack.c.bf16 %v1056_v60, %v1056_v60 }
 0x22c   : > { %1084 = vst.msk [vmem:[%s473_s23 + $0x4] sm:$0xf] %vm1082_vm2, %v1075_v12 }
 0x237   : > { %v1059_v4 = vpop.f32.mrf.mxu1 }
 0x238   : > { %v1076_v47 = vpack.c.bf16 %v1059_v4, %v1059_v4 }
 0x23a   : > { %1085 = vst.msk [vmem:[%s473_s23 + $0x8] sm:$0xf] %vm1082_vm2, %v1076_v47 }
 0x23f   : > { %v1061_v57 = vpop.f32.mrf.mxu1 }
 0x240   : > { %v1077_v29 = vpack.c.bf16 %v1061_v57, %v1061_v57 }
 0x242   : > { %1086 = vst.msk [vmem:[%s473_s23 + $0xc] sm:$0xf] %vm1082_vm2, %v1077_v29 }
 0x24f   : > { %v1064_v6 = vpop.f32.mrf.mxu2 }
 0x250   : > { %v1078_v35 = vpack.c.bf16 %v1064_v6, %v1064_v6 }
 0x252   : > { %1087 = vst.msk [vmem:[%s473_s23 + $0x10] sm:$0xf] %vm1082_vm2, %v1078_v35 }
 0x257   : > { %v1066_v58 = vpop.f32.mrf.mxu2 }
 0x258   : > { %v1079_v7 = vpack.c.bf16 %v1066_v58, %v1066_v58 }
 0x25a   : > { %1088 = vst.msk [vmem:[%s473_s23 + $0x14] sm:$0xf] %vm1082_vm2, %v1079_v7 }
 0x260   : > { %v1069_v21 = vpop.f32.mrf.mxu3 }
 0x261   : > { %v1080_v46 = vpack.c.bf16 %v1069_v21, %v1069_v21 }
 0x263   : > { %1089 = vst.msk [vmem:[%s473_s23 + $0x18] sm:$0xf] %vm1082_vm2, %v1080_v46 }
 0x268   : > { %v1071_v32 = vpop.f32.mrf.mxu3 }
 0x269   : > { %v1081_v17 = vpack.c.bf16 %v1071_v32, %v1071_v32 }
 0x26b   : > { %1090 = vst.msk [vmem:[%s473_s23 + $0x1c] sm:$0xf] %vm1082_vm2, %v1081_v17 }
 0x26c PF: > { %p15_p9 = scmp.ge.s32.totalorder %s1402_s9, 4   ;;  %s1833_s27 = smov %s1333_s28 }
 0x26d   : > { %s1834_s28 = smov %s1411_s12  ;;  %s1835_s29 = smov %s1402_s9 }
 0x26e   :  { %17 = sbr.rel (!%p15_p9) target bundleno = 2 (0x2), region = 131 }

</bundles_post_ra>
